<compile_context>
chip_gen: v5e
topology: v5e:2x2
jax: 0.10.0
libtpu: 0.0.40
codegen_flags: <defaults>
</compile_context>

<pallas_src>
import jax
import jax.numpy as jnp
from jax.experimental import pallas as pl
from jax.experimental.pallas import tpu as pltpu

NUM_FEATURES = 30
H1 = 15
CODE = 7


def autoencoder_kernel(x_ref,
                       w1_ref, b1_ref,
                       w2_ref, b2_ref,
                       w3_ref, b3_ref,
                       w4_ref, b4_ref,
                       out_ref):
    # x_ref: (30, TB) tile — features on sublanes, batch on lanes (lane-dense).
    x = x_ref[...].astype(jnp.float32)

    # ----- encoder -----
    h = jnp.dot(w1_ref[...], x, preferred_element_type=jnp.float32) + b1_ref[...]
    h = jnp.maximum(h, 0.0)                                        # ReLU(inplace=True)
    z = jnp.dot(w2_ref[...], h, preferred_element_type=jnp.float32) + b2_ref[...]

    # ----- decoder -----
    d = jnp.dot(w3_ref[...], z, preferred_element_type=jnp.float32) + b3_ref[...]
    d = jnp.maximum(d, 0.0)                                        # ReLU(inplace=True)
    y = jnp.dot(w4_ref[...], d, preferred_element_type=jnp.float32) + b4_ref[...]
    out_ref[...] = jnp.tanh(y).astype(out_ref.dtype)               # Tanh


def autoencoder_forward(x, params, *, tb=1024, out_dtype=None):
    """x: (B, NUM_FEATURES). params: PyTorch-layout (out,in) weights, (out,1) biases.

    Returns (B, NUM_FEATURES) in `out_dtype` (defaults to x.dtype).
    """
    B, F = x.shape
    assert F == NUM_FEATURES
    out_dtype = jnp.dtype(out_dtype if out_dtype is not None else x.dtype)

    # Batch tile: multiple of 128 (lane axis), capped so tiny batches don't over-pad.
    TB = min(int(tb), pl.cdiv(B, 128) * 128)
    Bp = pl.cdiv(B, TB) * TB
    grid = (Bp // TB,)

    # Lane-dense layout: (features, batch); zero-pad the ragged last tile.
    xt = jnp.pad(x.T, ((0, 0), (0, Bp - B)))

    args = (
        xt,
        params["w1"], params["b1"],
        params["w2"], params["b2"],
        params["w3"], params["b3"],
        params["w4"], params["b4"],
    )

    in_specs = [pl.BlockSpec((NUM_FEATURES, TB), lambda i: (0, i))]
    # Weights/biases: full-extent blocks, constant index_map -> resident, no re-DMA.
    in_specs += [pl.BlockSpec(a.shape, lambda i: (0, 0)) for a in args[1:]]
    out_spec = pl.BlockSpec((NUM_FEATURES, TB), lambda i: (0, i))

    flops = 2 * Bp * (NUM_FEATURES * H1 + H1 * CODE + CODE * H1 + H1 * NUM_FEATURES)
    bytes_accessed = (
        xt.size * xt.dtype.itemsize
        + Bp * NUM_FEATURES * out_dtype.itemsize
        + sum(int(a.size) * a.dtype.itemsize for a in args[1:])
    )

    yt = pl.pallas_call(
        autoencoder_kernel,
        grid=grid,
        in_specs=in_specs,
        out_specs=out_spec,
        out_shape=jax.ShapeDtypeStruct((NUM_FEATURES, Bp), out_dtype),
        compiler_params=pltpu.CompilerParams(
            dimension_semantics=("parallel",)),            # v7x: shard tiles over 2 TCs
        cost_estimate=pl.CostEstimate(
            flops=flops,
            transcendentals=Bp * NUM_FEATURES,             # tanh
            bytes_accessed=bytes_accessed),
    )(*args)

    return yt[:, :B].T


def init_params(key):
    """PyTorch nn.Linear-style init: weights (out,in), biases (out,1), U(+-1/sqrt(fan_in))."""
    def linear(key, fan_in, fan_out):
        kw, kb = jax.random.split(key)
        bound = 1.0 / jnp.sqrt(float(fan_in))
        w = jax.random.uniform(kw, (fan_out, fan_in), jnp.float32, -bound, bound)
        b = jax.random.uniform(kb, (fan_out, 1), jnp.float32, -bound, bound)
        return w, b

    k1, k2, k3, k4 = jax.random.split(key, 4)
    w1, b1 = linear(k1, NUM_FEATURES, H1)   # encoder Linear(30, 15)
    w2, b2 = linear(k2, H1, CODE)           # encoder Linear(15, 7)
    w3, b3 = linear(k3, CODE, H1)           # decoder Linear(7, 15)
    w4, b4 = linear(k4, H1, NUM_FEATURES)   # decoder Linear(15, 30)
    return dict(w1=w1, b1=b1, w2=w2, b2=b2, w3=w3, b3=b3, w4=w4, b4=b4)


def reference_forward(x, p):
    """Pure-JAX reference, (B, F) layout, PyTorch semantics."""
    h = jnp.maximum(x @ p["w1"].T + p["b1"].T, 0.0)
    z = h @ p["w2"].T + p["b2"].T
    d = jnp.maximum(z @ p["w3"].T + p["b3"].T, 0.0)
    return jnp.tanh(d @ p["w4"].T + p["b4"].T)


if __name__ == "__main__":
    key = jax.random.PRNGKey(0)
    kx, kp = jax.random.split(key)
    params = init_params(kp)

    # Small multi-tile test: tb=128 -> 3 batch tiles incl. a ragged (padded) last tile.
    batch = 300
    x = jax.random.normal(kx, (batch, NUM_FEATURES), jnp.float32)
    ref = reference_forward(x, params)

    out = jax.block_until_ready(autoencoder_forward(x, params, tb=128))
    assert out.shape == (batch, NUM_FEATURES)
    assert out.dtype == jnp.float32
    assert jnp.allclose(out, ref, atol=1e-5, rtol=1e-5), "f32 mismatch vs reference"

    # bf16 activation I/O path (halves HBM traffic; math stays f32 inside the kernel).
    out_bf = jax.block_until_ready(
        autoencoder_forward(x.astype(jnp.bfloat16), params, out_dtype=jnp.bfloat16))
    assert out_bf.shape == (batch, NUM_FEATURES)
    assert out_bf.dtype == jnp.bfloat16
    assert jnp.allclose(out_bf.astype(jnp.float32), ref, atol=3e-2, rtol=3e-2), \
        "bf16 mismatch vs reference"

    print("KERNEL_OK")
</pallas_src>

<mosaic_0001>
module attributes {stable_mosaic.version = 11 : i64} {
  func.func @autoencoder_kernel(%arg0: i32, %arg1: memref<30x128xf32, #tpu.memory_space<vmem>>, %arg2: memref<15x30xf32, #tpu.memory_space<vmem>>, %arg3: memref<15x1xf32, #tpu.memory_space<vmem>>, %arg4: memref<7x15xf32, #tpu.memory_space<vmem>>, %arg5: memref<7x1xf32, #tpu.memory_space<vmem>>, %arg6: memref<15x7xf32, #tpu.memory_space<vmem>>, %arg7: memref<15x1xf32, #tpu.memory_space<vmem>>, %arg8: memref<30x15xf32, #tpu.memory_space<vmem>>, %arg9: memref<30x1xf32, #tpu.memory_space<vmem>>, %arg10: memref<30x128xf32, #tpu.memory_space<vmem>>) attributes {dimension_semantics = [#tpu.dimension_semantics<parallel>], iteration_bounds = array<i64: 3>, scalar_prefetch = 0 : i64, scratch_operands = 0 : i64, tpu.core_type = #tpu.core_type<tc>, window_params = [{transform_indices = @transform_0, window_bounds = array<i64: 30, 128>}, {pipeline_mode = #tpu.pipeline_mode<synchronous>, transform_indices = @transform_1, window_bounds = array<i64: 15, 30>}, {pipeline_mode = #tpu.pipeline_mode<synchronous>, transform_indices = @transform_2, window_bounds = array<i64: 15, 1>}, {pipeline_mode = #tpu.pipeline_mode<synchronous>, transform_indices = @transform_3, window_bounds = array<i64: 7, 15>}, {pipeline_mode = #tpu.pipeline_mode<synchronous>, transform_indices = @transform_4, window_bounds = array<i64: 7, 1>}, {pipeline_mode = #tpu.pipeline_mode<synchronous>, transform_indices = @transform_5, window_bounds = array<i64: 15, 7>}, {pipeline_mode = #tpu.pipeline_mode<synchronous>, transform_indices = @transform_6, window_bounds = array<i64: 15, 1>}, {pipeline_mode = #tpu.pipeline_mode<synchronous>, transform_indices = @transform_7, window_bounds = array<i64: 30, 15>}, {pipeline_mode = #tpu.pipeline_mode<synchronous>, transform_indices = @transform_8, window_bounds = array<i64: 30, 1>}, {transform_indices = @transform_9, window_bounds = array<i64: 30, 128>}]} {
    %c0 = arith.constant 0 : index
    %c0_0 = arith.constant 0 : index
    %0 = vector.load %arg1[%c0, %c0_0] : memref<30x128xf32, #tpu.memory_space<vmem>>, vector<30x128xf32>
    %c0_1 = arith.constant 0 : index
    %c0_2 = arith.constant 0 : index
    %1 = vector.load %arg2[%c0_1, %c0_2] : memref<15x30xf32, #tpu.memory_space<vmem>>, vector<15x30xf32>
    %cst = arith.constant dense<0.000000e+00> : vector<15x128xf32>
    %2 = tpu.matmul %1, %0, %cst {dimension_numbers = #tpu.dot_dimension_numbers<[1], [0], [0], [1], [0, 0, 1, 1], [], []>} : vector<15x30xf32>, vector<30x128xf32>, vector<15x128xf32> -> vector<15x128xf32>
    %c0_3 = arith.constant 0 : index
    %c0_4 = arith.constant 0 : index
    %3 = vector.load %arg3[%c0_3, %c0_4] : memref<15x1xf32, #tpu.memory_space<vmem>>, vector<15x1xf32>
    %4 = vector.broadcast %3 : vector<15x1xf32> to vector<15x128xf32>
    %5 = arith.addf %2, %4 : vector<15x128xf32>
    %cst_5 = arith.constant 0.000000e+00 : f32
    %6 = vector.broadcast %cst_5 : f32 to vector<15x128xf32>
    %7 = arith.maximumf %5, %6 : vector<15x128xf32>
    %c0_6 = arith.constant 0 : index
    %c0_7 = arith.constant 0 : index
    %8 = vector.load %arg4[%c0_6, %c0_7] : memref<7x15xf32, #tpu.memory_space<vmem>>, vector<7x15xf32>
    %cst_8 = arith.constant dense<0.000000e+00> : vector<7x128xf32>
    %9 = tpu.matmul %8, %7, %cst_8 {dimension_numbers = #tpu.dot_dimension_numbers<[1], [0], [0], [1], [0, 0, 1, 1], [], []>} : vector<7x15xf32>, vector<15x128xf32>, vector<7x128xf32> -> vector<7x128xf32>
    %c0_9 = arith.constant 0 : index
    %c0_10 = arith.constant 0 : index
    %10 = vector.load %arg5[%c0_9, %c0_10] : memref<7x1xf32, #tpu.memory_space<vmem>>, vector<7x1xf32>
    %11 = vector.broadcast %10 : vector<7x1xf32> to vector<7x128xf32>
    %12 = arith.addf %9, %11 : vector<7x128xf32>
    %c0_11 = arith.constant 0 : index
    %c0_12 = arith.constant 0 : index
    %13 = vector.load %arg6[%c0_11, %c0_12] : memref<15x7xf32, #tpu.memory_space<vmem>>, vector<15x7xf32>
    %cst_13 = arith.constant dense<0.000000e+00> : vector<15x128xf32>
    %14 = tpu.matmul %13, %12, %cst_13 {dimension_numbers = #tpu.dot_dimension_numbers<[1], [0], [0], [1], [0, 0, 1, 1], [], []>} : vector<15x7xf32>, vector<7x128xf32>, vector<15x128xf32> -> vector<15x128xf32>
    %c0_14 = arith.constant 0 : index
    %c0_15 = arith.constant 0 : index
    %15 = vector.load %arg7[%c0_14, %c0_15] : memref<15x1xf32, #tpu.memory_space<vmem>>, vector<15x1xf32>
    %16 = vector.broadcast %15 : vector<15x1xf32> to vector<15x128xf32>
    %17 = arith.addf %14, %16 : vector<15x128xf32>
    %cst_16 = arith.constant 0.000000e+00 : f32
    %18 = vector.broadcast %cst_16 : f32 to vector<15x128xf32>
    %19 = arith.maximumf %17, %18 : vector<15x128xf32>
    %c0_17 = arith.constant 0 : index
    %c0_18 = arith.constant 0 : index
    %20 = vector.load %arg8[%c0_17, %c0_18] : memref<30x15xf32, #tpu.memory_space<vmem>>, vector<30x15xf32>
    %cst_19 = arith.constant dense<0.000000e+00> : vector<30x128xf32>
    %21 = tpu.matmul %20, %19, %cst_19 {dimension_numbers = #tpu.dot_dimension_numbers<[1], [0], [0], [1], [0, 0, 1, 1], [], []>} : vector<30x15xf32>, vector<15x128xf32>, vector<30x128xf32> -> vector<30x128xf32>
    %c0_20 = arith.constant 0 : index
    %c0_21 = arith.constant 0 : index
    %22 = vector.load %arg9[%c0_20, %c0_21] : memref<30x1xf32, #tpu.memory_space<vmem>>, vector<30x1xf32>
    %23 = vector.broadcast %22 : vector<30x1xf32> to vector<30x128xf32>
    %24 = arith.addf %21, %23 : vector<30x128xf32>
    %25 = math.tanh %24 : vector<30x128xf32>
    %c0_22 = arith.constant 0 : index
    %c0_23 = arith.constant 0 : index
    %26 = vector.load %arg10[%c0_22, %c0_23] : memref<30x128xf32, #tpu.memory_space<vmem>>, vector<30x128xf32>
    tpu.vector_store %arg10[%c0_22, %c0_23], %25 {strides = array<i32>} : memref<30x128xf32, #tpu.memory_space<vmem>>, vector<30x128xf32>,
    return
  }
  func.func @transform_0(%arg0: i32) -> (i32, i32) {
    %c0_i32 = arith.constant 0 : i32
    %c0_i32_0 = arith.constant 0 : i32
    return %c0_i32, %arg0 : i32, i32
  }
  func.func @transform_1(%arg0: i32) -> (i32, i32) {
    %c0_i32 = arith.constant 0 : i32
    %c0_i32_0 = arith.constant 0 : i32
    %c0_i32_1 = arith.constant 0 : i32
    return %c0_i32, %c0_i32_0 : i32, i32
  }
  func.func @transform_2(%arg0: i32) -> (i32, i32) {
    %c0_i32 = arith.constant 0 : i32
    %c0_i32_0 = arith.constant 0 : i32
    %c0_i32_1 = arith.constant 0 : i32
    return %c0_i32, %c0_i32_0 : i32, i32
  }
  func.func @transform_3(%arg0: i32) -> (i32, i32) {
    %c0_i32 = arith.constant 0 : i32
    %c0_i32_0 = arith.constant 0 : i32
    %c0_i32_1 = arith.constant 0 : i32
    return %c0_i32, %c0_i32_0 : i32, i32
  }
  func.func @transform_4(%arg0: i32) -> (i32, i32) {
    %c0_i32 = arith.constant 0 : i32
    %c0_i32_0 = arith.constant 0 : i32
    %c0_i32_1 = arith.constant 0 : i32
    return %c0_i32, %c0_i32_0 : i32, i32
  }
  func.func @transform_5(%arg0: i32) -> (i32, i32) {
    %c0_i32 = arith.constant 0 : i32
    %c0_i32_0 = arith.constant 0 : i32
    %c0_i32_1 = arith.constant 0 : i32
    return %c0_i32, %c0_i32_0 : i32, i32
  }
  func.func @transform_6(%arg0: i32) -> (i32, i32) {
    %c0_i32 = arith.constant 0 : i32
    %c0_i32_0 = arith.constant 0 : i32
    %c0_i32_1 = arith.constant 0 : i32
    return %c0_i32, %c0_i32_0 : i32, i32
  }
  func.func @transform_7(%arg0: i32) -> (i32, i32) {
    %c0_i32 = arith.constant 0 : i32
    %c0_i32_0 = arith.constant 0 : i32
    %c0_i32_1 = arith.constant 0 : i32
    return %c0_i32, %c0_i32_0 : i32, i32
  }
  func.func @transform_8(%arg0: i32) -> (i32, i32) {
    %c0_i32 = arith.constant 0 : i32
    %c0_i32_0 = arith.constant 0 : i32
    %c0_i32_1 = arith.constant 0 : i32
    return %c0_i32, %c0_i32_0 : i32, i32
  }
  func.func @transform_9(%arg0: i32) -> (i32, i32) {
    %c0_i32 = arith.constant 0 : i32
    %c0_i32_0 = arith.constant 0 : i32
    return %c0_i32, %arg0 : i32, i32
  }
}

</mosaic_0001>

<bundles_post_ra>
// kernel: tpu_custom_call.1
= control target key start
LH: loop header
LB: loop body
LE: loop exit
PB: predicated region body
PF: predicated region fallthrough
CT: control target
= control target key end

     0   :  { %14 = vsyncpa [#allocation4], 0  ;;  %s1036_s0 = inlined_call_operand.vmem [shape: f32[30,384], index: 0, kind: input, shape index: {}]   ;;  %s1037_s1 = inlined_call_operand.vmem [shape: f32[15,30], index: 1, kind: input, shape index: {}]   ;;  %s1038_s2 = inlined_call_operand.vmem [shape: f32[15,1], index: 2, kind: input, shape index: {}]   ;;  %s1039_s3 = inlined_call_operand.vmem [shape: f32[7,15], index: 3, kind: input, shape index: {}]   ;;  %s1040_s4 = inlined_call_operand.vmem [shape: f32[7,1], index: 4, kind: input, shape index: {}]   ;;  %s1041_s5 = inlined_call_operand.vmem [shape: f32[15,7], index: 5, kind: input, shape index: {}]   ;;  %s1042_s6 = inlined_call_operand.vmem [shape: f32[15,1], index: 6, kind: input, shape index: {}]   ;;  %s1043_s7 = inlined_call_operand.vmem [shape: f32[30,15], index: 7, kind: input, shape index: {}]   ;;  %s1044_s8 = inlined_call_operand.vmem [shape: f32[30,1], index: 8, kind: input, shape index: {}]   ;;  %s1045_s9 = inlined_call_operand.hbm [shape: f32[30,384], index: 9, kind: output, shape index: {}]  }
   0x1   :  { %16 = vsyncpa [#allocation4 + $0x1], 0  ;;  %s878_s30 = smov 0   ;;  %s880_s10 = smov 0  }
   0x2   :  { %s882_s11 = smov 0   ;;  %s884_s12 = smov 0  }
   0x3 LB: > { %s678_s13 = sadd.s32 4294967295, %s822_s12   ;;  %s679_s14 = sadd.s32 4294967294, %s822_s12   ;;  %s822_s12 = sphi %s884_s12, %s1051_s12   ;;  %s818_s11 = sphi %s882_s11, %s1050_s11   ;;  %s814_s10 = sphi %s880_s10, %s1049_s10   ;;  %s810_s30 = sphi %s878_s30, %s1048_s30  }
   0x4   : > { %s901_s15 = sadd.s32 1, %s822_s12   ;;  %s29_s16 = sadd.s32 1, %s818_s11 }
   0x5   : > { %s26_s17 = ssub.s32 %s822_s12, %s901_s15  ;;  %p36_p0 = scmp.ne.s32.totalorder %s818_s11, %s814_s10 }
   0x6   : > { %p27_p1 = scmp.eq.s32.totalorder %s26_s17, 0  ;;  %p37_p2 = scmp.eq.s32.totalorder %s822_s12, 0 }
   0x7   : > { %p234_p3 = scmp.eq.s32.totalorder %s678_s13, 2  ;;  %p239_p4 = scmp.ne.s32.totalorder %s814_s10, %s810_s30 }
   0x8   : > { %s914_s18 = scalar_select %p27_p1, %s818_s11, %s29_s16  }
   0x9   : > { %p38_p5 = por %p37_p2, %p36_p0  ;;  %p916_p6 = por %p234_p3, %p36_p0 }
   0xa   : > { %p240_p7 = scmp.eq.s32.totalorder %s679_s14, 2  ;;  %p681_p9 = scmp.ge.s32.totalorder %s822_s12, 3 }
   0xc   : > { %p920_p8 = por %p240_p7, %p239_p4  ;;  %280 = sbr.rel (%p681_p9) target bundleno = 25 (0x19), region = 48 }
  0x11   : > { %283 = sbr.rel (!%p38_p5) target bundleno = 25 (0x19), region = 52  ;;  %s285_s21 = sand.u32 (%p38_p5), 1, %s818_s11  }
  0x12   : > { %s683_s22 = sshll.u32 (%p38_p5), %s822_s12, 3  ;;  %s682_s23 = sshll.u32 (%p38_p5), %s285_s21, 5 }
  0x13   : > { %s289_s26 = scalar_lea.vmem (%p38_p5), %s1036_s0, %s683_s22  ;;  %s287_s27 = scalar_lea.vmem (%p38_p5), [#allocation2], %s682_s23 }
  0x14   : > { %v324_v0 = vld [vmem:[%s289_s26] sm:$0xff] (%p38_p5)  ;;  %v326_v1 = vld [vmem:[%s289_s26 + $0x18] sm:$0xff] (%p38_p5)  ;;  %v328_v2 = vld [vmem:[%s289_s26 + $0x30] sm:$0xff] (%p38_p5) }
  0x15   : > { %325 = vst [vmem:[%s287_s27] sm:$0xff] (%p38_p5), %v324_v0  ;;  %v330_v3 = vld [vmem:[%s289_s26 + $0x48] sm:$0xff] (%p38_p5) }
  0x16   : > { %327 = vst [vmem:[%s287_s27 + $0x8] sm:$0xff] %v326_v1 }
  0x17   : > { %329 = vst [vmem:[%s287_s27 + $0x10] sm:$0xff] %v328_v2 }
  0x18   : > { %331 = vst [vmem:[%s287_s27 + $0x18] sm:$0xff] %v330_v3 }
  0x19 PF: > { %p684_p10 = scmp.ge.s32.totalorder %s822_s12, 1  ;;  %p336_p11 = scmp.lt.s32.totalorder %s822_s12, 4 }
  0x1b   : > { %p337_p12 = pnand %p684_p10, %p336_p11 }
  0x1c   : > { %s343_s28 = sand.u32 (!%p337_p12), 1, %s814_s10   ;;  %s701_s26 = sshll.u32 (!%p337_p12), %s678_s13, 3 }
  0x1d   : > { %340 = sbr.rel (%p337_p12) target bundleno = 623 (0x26f), region = 90  ;;  %s938_s16 = sshll.u32 (!%p337_p12), %s343_s28, 5 }
  0x1e   : > { %s345_s17 = scalar_lea.vmem (!%p337_p12), [#allocation2], %s938_s16  ;;  %s377_s25 = scalar_lea.vmem (!%p337_p12), [#allocation3], %s938_s16 }
  0x1f   : > { %s607_s14 = scalar_lea.hbm (!%p337_p12), %s1045_s9, %s701_s26  ;;  %s608_s16 = sshll.u32 (!%p337_p12), %s377_s25, 4  ;;  %s609_s16 = int_to_ptr.vmem [resolvable:$true] %s608_s16 }
  0x20   : > { %s597_s21 = scalar_lea.sflag (!%p337_p12), [#allocation4], %s343_s28  ;;  %s780_s26 = scalar_lea.hbm (!%p337_p12), %s1045_s9, 96 }
  0x22   : > { %v385_v4 = vld [vmem:[%s1038_s2 + $0x8] sm:$0x7f]  ;;  %vm403_vm0 = vcmask 1045504   ;;  %v824_v5 = vmov 0   ;;  %v381_v6 = vld [vmem:[%s345_s17 + $0x18] sm:$0x3f] }
  0x23   : > { %749 = vset.pattern.permute.xlu0 %v824_v5  ;;  %750 = vset.pattern.permute.xlu1 %v824_v5  ;;  %v380_v7 = vld [vmem:[%s345_s17 + $0x10] sm:$0xff]  ;;  %v379_v8 = vld [vmem:[%s345_s17 + $0x8] sm:$0xff]  ;;  %v378_v9 = vld [vmem:[%s345_s17] sm:$0xff]  ;;  %vm396_vm1 = vcmask 244736   ;;  %vm443_vm2 = vcmask 1046528   ;;  %vm439_vm3 = vcmask 121856  }
  0x24   : > { %393 = vperm.xlu0 %749, %v385_v4   ;;  %751 = vset.pattern.permute.xlu2 %v824_v5  ;;  %v384_v10 = vld [vmem:[%s1038_s2] sm:$0xff]  ;;  %v521_v12 = vld [vmem:[%s1044_s8 + $0x8] sm:$0xff]  ;;  %v522_v16 = vld [vmem:[%s1044_s8 + $0x10] sm:$0xff]  ;;  %vm481_vm4 = vcmask 56320   ;;  %s610_s17 = sshll.u32 %s607_s14, 4  ;;  %s611_s17 = int_to_ptr.hbm [resolvable:$true] %s610_s17 }
  0x25   : > { %687 = vmatpush.msk.msra.mxu0 %vm403_vm0, %v381_v6  ;;  %v382_v11 = vld [vmem:[%s1037_s1] sm:$0xff]  ;;  %v383_v13 = vld [vmem:[%s1037_s1 + $0x8] sm:$0x7f]  ;;  %v523_v28 = vld [vmem:[%s1044_s8 + $0x18] sm:$0x3f]  ;;  %s774_s13 = sshra.s32 %s611_s17, 4  ;;  %s775_s13 = int_to_ptr.hbm [resolvable:$true] %s774_s13 }
  0x26   : > { %v433_v14 = vld [vmem:[%s1040_s4] sm:$0x7f]  ;;  %v470_v15 = vld [vmem:[%s1042_s6 + $0x8] sm:$0x7f]  ;;  %v518_v44 = vld [vmem:[%s1043_s7 + $0x10] sm:$0xff]  ;;  %s776_s22 = scalar_lea.hbm %s775_s13, 32  ;;  %p781_p2 = scmp.lt.s32.totalorder %s775_s13, %s1045_s9 }
  0x27   : > { %420 = vmatpush.msra.mxu0 %v380_v7  ;;  %436 = vperm.xlu1 %750, %v433_v14   ;;  %v432_v25 = vld [vmem:[%s1039_s3] sm:$0x7f]  ;;  %v468_v33 = vld [vmem:[%s1041_s5 + $0x8] sm:$0x7f]  ;;  %v519_v45 = vld [vmem:[%s1043_s7 + $0x18] sm:$0x3f]  ;;  %p777_p13 = scmp.ne.s32.totalorder %s775_s13, %s776_s22  ;;  %p782_p3 = scmp.lt.s32.totalorder %s780_s26, %s776_s22 }
  0x28   : > { %v469_v26 = vld [vmem:[%s1042_s6] sm:$0xff]  ;;  %v517_v43 = vld [vmem:[%s1043_s7 + $0x8] sm:$0xff] }
  0x29   : > { %421 = vmatpush.msra.mxu0 %v379_v8  ;;  %473 = vperm.xlu2 %751, %v469_v26   ;;  %v520_v27 = vld [vmem:[%s1044_s8] sm:$0xff]  ;;  %p778_p0 = pnand %p777_p13, %p916_p6  ;;  %p783_p4 = por %p782_p3, %p781_p2 }
  0x2a   : > { %v467_v32 = vld [vmem:[%s1041_s5] sm:$0xff] }
  0x2b   : > { %422 = vmatpush.msra.mxu0 %v378_v9  ;;  %v516_v42 = vld [vmem:[%s1043_s7] sm:$0xff]  ;;  %p779_p1 = pneg %p778_p0 }
  0x2c   : > { %388 = vperm.xlu0 %749, %v384_v10   ;;  %688 = vmatmul.msk.f32.vlgmr.msra.gmra.mxu0 %vm396_vm1, %v382_v11 }
  0x2d   : > { %p784_p5 = pnand %p783_p4, %p779_p1 }
  0x2f   : > { %478 = vperm.xlu1 %750, %v470_v15  }
  0x31   : > { %526 = vperm.xlu2 %751, %v520_v27  }
  0x34   : > { %531 = vperm.xlu0 %749, %v521_v12   ;;  %689 = vmatmul.msk.f32.gmra.mxu0 %vm396_vm1, %v383_v13 }
  0x37   : > { %536 = vperm.xlu1 %750, %v522_v16  }
  0x39   : > { %541 = vperm.xlu2 %751, %v523_v28  }
  0x83   : > { %v474_v36 = vpop.permute.xlu2 %473 }
  0x8b   : > { %v527_v46 = vpop.permute.xlu2 %526 }
  0x93   : > { %v542_v57 = vpop.permute.xlu2 %541 }
  0x96   : > { %v394_v17 = vpop.permute.xlu0 %393 }
  0x99   : > { %v437_v29 = vpop.permute.xlu1 %436 }
  0x9e   : > { %v389_v19 = vpop.permute.xlu0 %388 }
  0xa1   : > { %v479_v35 = vpop.permute.xlu1 %478 }
  0xa6   : > { %v532_v49 = vpop.permute.xlu0 %531 }
  0xa9   : > { %v424_v18 = vpop.f32.mrf.mxu0  ;;  %v537_v53 = vpop.permute.xlu1 %536 }
  0xaa   : > { %v425_v21 = vadd.f32 %v424_v18, %v389_v19 }
  0xac   : > { %v430_v24 = vmax.f32 %v425_v21, 0.0 }
  0xb1   : > { %v427_v20 = vpop.f32.mrf.mxu0 }
  0xb2   : > { %v428_v22 = vadd.f32 %v427_v20, %v394_v17 }
  0xb4   : > { %v431_v23 = vmax.f32 %v428_v22, 0.0 }
  0xb6   : > { %690 = vmatpush.msk.msra.mxu1 %vm443_vm2, %v431_v23 }
  0xb8   : > { %462 = vmatpush.msra.mxu1 %v430_v24 }
  0xb9   : > { %691 = vmatmul.msk.f32.vlgmr.msra.gmra.mxu1 %vm439_vm3, %v432_v25 }
 0x136   : > { %v464_v30 = vpop.f32.mrf.mxu1 }
 0x137   : > { %v465_v31 = vadd.f32 %v464_v30, %v437_v29 }
 0x139   : > { %692 = vmatpush.msk.msra.mxu2 %vm443_vm2, %v465_v31 }
 0x13a   : > { %693 = vmatmul.msk.f32.vlgmr.msra.gmra.mxu2 %vm481_vm4, %v467_v32 }
 0x142   : > { %694 = vmatmul.msk.f32.gmra.mxu2 %vm481_vm4, %v468_v33 }
 0x1bd   : > { %v508_v34 = vpop.f32.mrf.mxu2 }
 0x1be   : > { %v509_v38 = vadd.f32 %v508_v34, %v474_v36 }
 0x1c0   : > { %v514_v41 = vmax.f32 %v509_v38, 0.0 }
 0x1c5   : > { %v511_v37 = vpop.f32.mrf.mxu2 }
 0x1c6   : > { %v512_v39 = vadd.f32 %v511_v37, %v479_v35 }
 0x1c8   : > { %v515_v40 = vmax.f32 %v512_v39, 0.0 }
 0x1ca   : > { %695 = vmatpush.msk.msrb.mxu1 %vm443_vm2, %v515_v40  ;;  %704 = vmatpush.msk.msra.mxu3 %vm443_vm2, %v515_v40 }
 0x1cc   : > { %574 = vmatpush.msrb.mxu1 %v514_v41  ;;  %705 = vmatpush.msra.mxu3 %v514_v41 }
 0x1cd   : > { %696 = vmatmul.msk.f32.vlgmr.msrb.gmra.mxu1 %vm439_vm3, %v516_v42  ;;  %697 = vmatmul.msk.f32.vlgmr.msra.gmra.mxu3 %vm439_vm3, %v517_v43 }
 0x1d5   : > { %698 = vmatmul.msk.f32.gmra.mxu3 %vm439_vm3, %v518_v44 }
 0x1dd   : > { %699 = vmatmul.msk.f32.gmra.mxu3 %vm439_vm3, %v519_v45 }
 0x24a   : > { %v576_v47 = vpop.f32.mrf.mxu1 }
 0x24b   : > { %v577_v48 = vadd.f32 %v576_v47, %v527_v46 }
 0x24d   : > { %752 = vtanh.f32 %v577_v48 }
 0x250   : > { %v579_v50 = vpop.f32.mrf.mxu3 }
 0x251   : > { %v580_v51 = vadd.f32 %v579_v50, %v532_v49 }
 0x253   : > { %v753_v52 = vpop.eup %752  ;;  %754 = vtanh.f32 %v580_v51 }
 0x254   : > { %592 = vst [vmem:[%s377_s25] sm:$0xff] %v753_v52 }
 0x258   : > { %v582_v54 = vpop.f32.mrf.mxu3 }
 0x259   : > { %v755_v55 = vpop.eup %754  ;;  %v583_v56 = vadd.f32 %v582_v54, %v537_v53 }
 0x25a   : > { %593 = vst [vmem:[%s377_s25 + $0x8] sm:$0xff] %v755_v55 }
 0x25b   : > { %756 = vtanh.f32 %v583_v56 }
 0x260   : > { %v585_v58 = vpop.f32.mrf.mxu3 }
 0x261   : > { %v757_v59 = vpop.eup %756  ;;  %v586_v60 = vadd.f32 %v585_v58, %v542_v57 }
 0x262   : > { %594 = vst [vmem:[%s377_s25 + $0x10] sm:$0xff] %v757_v59 }
 0x263   : > { %758 = vtanh.f32 %v586_v60 }
 0x269   : > { %v759_v61 = vpop.eup %758 }
 0x26a   : > { %595 = vst [vmem:[%s377_s25 + $0x18] sm:$0x3f] %v759_v61 }
 0x26b   : > { %787 = shalt.err (!%p784_p5)
}
 0x26c   : > { %s825_s28 = smov 128   ;;  %s826_s25 = smov 384  }
 0x26d   : > { %s827_s14 = smov 8  }
 0x26e   : > { %706 = dma.vmem_to_hbm [thread:$0]  (%p916_p6), %s609_s16, 512, %s611_s17, %s597_s21, %s825_s28, %s826_s25, %s827_s14  }
 0x26f PF: > { %p712_p7 = scmp.ge.s32.totalorder %s822_s12, 2  ;;  %s625_s23 = sand.u32 1, %s810_s30  }
 0x270   : > { %s626_s13 = scalar_lea.sflag [#allocation4], %s625_s23 }
 0x271   : > { %p709_p9 = pnand %p712_p7, %p920_p8 }
 0x273   : > { %p710_p10 = pneg %p709_p9 }
 0x275   : > { %805 = dma.done.wait (%p710_p10), %s626_s13, 512  }
 0x276   : > { %807 = vsyncadd (%p710_p10), %s626_s13, 4294966784  ;;  %p19_p11 = scmp.ge.s32.totalorder %s901_s15, 5   ;;  %s1048_s30 = smov %s814_s10 }
 0x277   : > { %s1049_s10 = smov %s818_s11  ;;  %s1050_s11 = smov %s914_s18 }
 0x278   : > { %s1051_s12 = smov %s901_s15  ;;  %21 = sbr.rel (!%p19_p11) target bundleno = 3 (0x3), region = 134 }
 0x27d   :  { %632 = vsyncpa [#allocation4], 1 }
 0x27e   :  { %634 = vsyncpa [#allocation4 + $0x1], 1 }

</bundles_post_ra>
